<compile_context>
chip_gen: v6e
topology: v6e:2x2x1
jax: 0.10.0
libtpu: 0.0.40
codegen_flags: <defaults>
</compile_context>

<pallas_src>
import functools

import jax
import jax.numpy as jnp
from jax.experimental import pallas as pl
from jax.experimental.pallas import tpu as pltpu


def _round_up(n, m):
    return ((n + m - 1) // m) * m


def _itemae_kernel(x_ref, w_ref, b_ref, out_ref):
    """Fused forward pass for one tile of packed rows.

    encode:  h = tanh(x @ Wq0 + bq0); z = tanh(h @ Wq1 + bq1)
    decode:  h = tanh(z @ Wp0 + bp0); y =       h @ Wp1 + bp1   (no tanh last)

    w_ref: (n_layers, L, L) bf16 block-diagonal packed weights (resident).
    b_ref: (n_layers, 1, L) f32 packed biases (resident).
    """
    n_layers = w_ref.shape[0]
    h = x_ref[...].astype(jnp.float32)
    for l in range(n_layers):
        z = jnp.dot(h.astype(jnp.bfloat16), w_ref[l],
                    preferred_element_type=jnp.float32) + b_ref[l]
        h = jnp.tanh(z) if l < n_layers - 1 else z
    out_ref[...] = h.astype(out_ref.dtype)


def pack_item_ae_params(params, input_dim, hidden_dims):
    """One-time parameter prep (hoisted out of the forward path).

    Packs `pack = 128 // d_pad` logical rows into one 128-lane physical row by
    building block-diagonal weights, pads every layer to a uniform (L, L)
    block (zero rows/cols are exact no-ops since tanh(0) = 0), stacks all
    layers into a single bf16 weight tensor and a single f32 bias tensor.
    """
    names = ["q0", "q1", "p0", "p1"]
    ws = [jnp.asarray(params["w" + n], jnp.float32) for n in names]   # (in, out)
    bs = [jnp.asarray(params["b" + n], jnp.float32).reshape(-1) for n in names]

    max_dim = max([input_dim] + list(hidden_dims))
    if max_dim <= 128:
        d_pad = 1
        while d_pad < max_dim:
            d_pad *= 2                       # power of two -> divides 128
        pack = 128 // d_pad
    else:
        d_pad = _round_up(max_dim, 128)      # lane-dense fallback, pack == 1
        pack = 1
    L = pack * d_pad

    eye = jnp.eye(pack, dtype=jnp.float32)
    w_blocks, b_blocks = [], []
    for w, b in zip(ws, bs):
        k, n = w.shape
        wb = jnp.zeros((d_pad, d_pad), jnp.float32).at[:k, :n].set(w)
        bb = jnp.zeros((d_pad,), jnp.float32).at[:n].set(b)
        w_full = jnp.kron(eye, wb) if pack > 1 else wb     # (L, L) block-diag
        b_full = jnp.tile(bb, pack)                        # (L,)
        w_blocks.append(w_full)
        b_blocks.append(b_full)

    w_stack = jnp.stack(w_blocks).astype(jnp.bfloat16)     # (4, L, L) bf16
    b_stack = jnp.stack(b_blocks)[:, None, :]              # (4, 1, L) f32
    return {"w_stack": w_stack, "b_stack": b_stack,
            "pack": pack, "d_pad": d_pad, "lane_width": L,
            "input_dim": input_dim}


def item_ae_forward(x, w_stack, b_stack, *, pack, d_pad, row_tile=4096):
    """Fused ItemAE forward.  x: (B, input_dim) f32.  Returns (B, input_dim)."""
    B, D_in = x.shape
    assert d_pad >= D_in, "packed params do not match this input dim"
    L = pack * d_pad

    # ---- pack rows into 128-lane-dense form (all pads are no-ops when the
    #      batch is already aligned; reshape of a contiguous array is free) ---
    xp = x.astype(jnp.float32)
    if d_pad != D_in:
        xp = jnp.pad(xp, ((0, 0), (0, d_pad - D_in)))
    row_pad = (-B) % pack
    if row_pad:
        xp = jnp.pad(xp, ((0, row_pad), (0, 0)))
    rows = (B + row_pad) // pack
    xp = xp.reshape(rows, L)

    # ---- tile selection: big tiles to amortize step overhead, but keep >=4
    #      grid steps when possible so megacore (v7x) can split the work -----
    if rows <= 8:
        tile = rows                                    # block == full array dim
    else:
        split_cap = max(512, _round_up(-(-rows // 4), 8))
        tile = min(_round_up(row_tile, 8), rows, split_cap)
        tile = max(8, (tile // 8) * 8)
    grid = (pl.cdiv(rows, tile),)                      # partial last block OK

    # ---- scoped VMEM: ~2x headroom over the live footprint, capped for v7x --
    vmem_limit = int(min(48 << 20, max(16 << 20, 16 * tile * L * 4)))

    # ---- advisory cost estimate (packed dims = what actually runs) ----------
    n_layers = int(w_stack.shape[0])
    cost = pl.CostEstimate(
        flops=2 * rows * n_layers * L * L,
        transcendentals=rows * (n_layers - 1) * L,
        bytes_accessed=2 * rows * L * 4 + int(w_stack.size) * 2
                       + int(b_stack.size) * 4)

    out = pl.pallas_call(
        _itemae_kernel,
        out_shape=jax.ShapeDtypeStruct((rows, L), jnp.float32),
        grid_spec=pltpu.PrefetchScalarGridSpec(
            num_scalar_prefetch=0,
            grid=grid,
            in_specs=[
                pl.BlockSpec((tile, L), lambda i: (i, 0)),
                pl.BlockSpec(w_stack.shape, lambda i: (0, 0, 0)),   # resident
                pl.BlockSpec(b_stack.shape, lambda i: (0, 0, 0)),   # resident
            ],
            out_specs=pl.BlockSpec((tile, L), lambda i: (i, 0)),
        ),
        compiler_params=pltpu.CompilerParams(
            dimension_semantics=("parallel",),
            vmem_limit_bytes=vmem_limit),
        cost_estimate=cost,
    )(xp, w_stack, b_stack)

    # ---- unpack lanes back to logical rows, drop padding --------------------
    out = out.reshape(rows * pack, d_pad)
    if d_pad != D_in:
        out = out[:, :D_in]
    if row_pad:
        out = out[:B]
    return out


def init_item_ae_params(key, input_dim, hidden_dims):
    """Deterministic init matching nn.Linear's default U(-1/sqrt(fan_in), ...).

    Returns weights transposed to (in, out) and biases as (1, out).
    """
    q_dims = [input_dim] + list(hidden_dims)
    p_dims = q_dims[::-1]
    names = ["q0", "q1", "p0", "p1"]
    dims = list(zip(q_dims[:-1], q_dims[1:])) + list(zip(p_dims[:-1], p_dims[1:]))
    params = {}
    for name, (d_in, d_out) in zip(names, dims):
        key, kw, kb = jax.random.split(key, 3)
        bound = 1.0 / jnp.sqrt(jnp.float32(d_in))
        params["w" + name] = jax.random.uniform(
            kw, (d_in, d_out), jnp.float32, -bound, bound)   # (in, out) == W.T
        params["b" + name] = jax.random.uniform(
            kb, (1, d_out), jnp.float32, -bound, bound)
    return params


def item_ae_reference(x, params):
    """Pure-JAX f32 reference of the same forward pass."""
    h = jnp.tanh(x @ params["wq0"] + params["bq0"])
    h = jnp.tanh(h @ params["wq1"] + params["bq1"])
    h = jnp.tanh(h @ params["wp0"] + params["bp0"])
    return h @ params["wp1"] + params["bp1"]


# TODO(synk): `recon_loss` is an externally supplied loss fn in the PyTorch
# module; only the forward pass is implemented as a kernel here.

if __name__ == "__main__":
    # Shapes consistent with the module: input_dim = 64, hidden_dims = [32, 16]
    input_dim = 64
    hidden_dims = [32, 16]

    key = jax.random.PRNGKey(0)
    key_x, key_x2, key_p = jax.random.split(key, 3)
    params = init_item_ae_params(key_p, input_dim, hidden_dims)

    # One-time parameter packing (hoisted out of the forward path).
    packed = pack_item_ae_params(params, input_dim, hidden_dims)
    fwd = jax.jit(functools.partial(
        item_ae_forward,
        pack=packed["pack"], d_pad=packed["d_pad"], row_tile=4096))

    # case 1: tiny batch (exercises small-rows full-block path + lane packing)
    x = jax.random.normal(key_x, (8, input_dim), jnp.float32)
    out = jax.block_until_ready(fwd(x, packed["w_stack"], packed["b_stack"]))
    ref = item_ae_reference(x, params)
    assert out.shape == x.shape
    assert jnp.allclose(out, ref, atol=3e-2, rtol=3e-2), \
        float(jnp.max(jnp.abs(out - ref)))

    # case 2: ragged batch not divisible by pack (exercises pad + partial tile)
    x2 = jax.random.normal(key_x2, (301, input_dim), jnp.float32)
    out2 = jax.block_until_ready(fwd(x2, packed["w_stack"], packed["b_stack"]))
    ref2 = item_ae_reference(x2, params)
    assert out2.shape == x2.shape
    assert jnp.allclose(out2, ref2, atol=3e-2, rtol=3e-2), \
        float(jnp.max(jnp.abs(out2 - ref2)))

    print("KERNEL_OK")
</pallas_src>

<mosaic_0001>
module attributes {stable_mosaic.version = 11 : i64} {
  func.func @_itemae_kernel(%arg0: i32, %arg1: memref<4x128xf32, #tpu.memory_space<vmem>>, %arg2: memref<4x128x128xbf16, #tpu.memory_space<vmem>>, %arg3: memref<4x1x128xf32, #tpu.memory_space<vmem>>, %arg4: memref<4x128xf32, #tpu.memory_space<vmem>>) attributes {dimension_semantics = [#tpu.dimension_semantics<parallel>], iteration_bounds = array<i64: 1>, scalar_prefetch = 0 : i64, scratch_operands = 0 : i64, tpu.core_type = #tpu.core_type<tc>, window_params = [{transform_indices = @transform_0, window_bounds = array<i64: 4, 128>}, {pipeline_mode = #tpu.pipeline_mode<synchronous>, transform_indices = @transform_1, window_bounds = array<i64: 4, 128, 128>}, {pipeline_mode = #tpu.pipeline_mode<synchronous>, transform_indices = @transform_2, window_bounds = array<i64: 4, 1, 128>}, {transform_indices = @transform_3, window_bounds = array<i64: 4, 128>}]} {
    %c0 = arith.constant 0 : index
    %c0_0 = arith.constant 0 : index
    %0 = vector.load %arg1[%c0, %c0_0] : memref<4x128xf32, #tpu.memory_space<vmem>>, vector<4x128xf32>
    %1 = arith.truncf %0 : vector<4x128xf32> to vector<4x128xbf16>
    %c0_1 = arith.constant 0 : index
    %c0_2 = arith.constant 0 : index
    %c0_3 = arith.constant 0 : index
    %2 = vector.load %arg2[%c0_1, %c0_2, %c0_3] : memref<4x128x128xbf16, #tpu.memory_space<vmem>>, vector<1x128x128xbf16>
    %3 = vector.shape_cast %2 : vector<1x128x128xbf16> to vector<128x128xbf16>
    %cst = arith.constant dense<0.000000e+00> : vector<4x128xf32>
    %4 = tpu.matmul %1, %3, %cst {dimension_numbers = #tpu.dot_dimension_numbers<[1], [0], [0], [1], [0, 0, 1, 1], [], []>} : vector<4x128xbf16>, vector<128x128xbf16>, vector<4x128xf32> -> vector<4x128xf32>
    %c0_4 = arith.constant 0 : index
    %c0_5 = arith.constant 0 : index
    %c0_6 = arith.constant 0 : index
    %5 = vector.load %arg3[%c0_4, %c0_5, %c0_6] : memref<4x1x128xf32, #tpu.memory_space<vmem>>, vector<1x1x128xf32>
    %6 = vector.shape_cast %5 : vector<1x1x128xf32> to vector<1x128xf32>
    %7 = vector.broadcast %6 : vector<1x128xf32> to vector<4x128xf32>
    %8 = arith.addf %4, %7 : vector<4x128xf32>
    %9 = math.tanh %8 : vector<4x128xf32>
    %10 = arith.truncf %9 : vector<4x128xf32> to vector<4x128xbf16>
    %c1 = arith.constant 1 : index
    %c0_7 = arith.constant 0 : index
    %c0_8 = arith.constant 0 : index
    %11 = vector.load %arg2[%c1, %c0_7, %c0_8] : memref<4x128x128xbf16, #tpu.memory_space<vmem>>, vector<1x128x128xbf16>
    %12 = vector.shape_cast %11 : vector<1x128x128xbf16> to vector<128x128xbf16>
    %cst_9 = arith.constant dense<0.000000e+00> : vector<4x128xf32>
    %13 = tpu.matmul %10, %12, %cst_9 {dimension_numbers = #tpu.dot_dimension_numbers<[1], [0], [0], [1], [0, 0, 1, 1], [], []>} : vector<4x128xbf16>, vector<128x128xbf16>, vector<4x128xf32> -> vector<4x128xf32>
    %c1_10 = arith.constant 1 : index
    %c0_11 = arith.constant 0 : index
    %c0_12 = arith.constant 0 : index
    %14 = vector.load %arg3[%c1_10, %c0_11, %c0_12] : memref<4x1x128xf32, #tpu.memory_space<vmem>>, vector<1x1x128xf32>
    %15 = vector.shape_cast %14 : vector<1x1x128xf32> to vector<1x128xf32>
    %16 = vector.broadcast %15 : vector<1x128xf32> to vector<4x128xf32>
    %17 = arith.addf %13, %16 : vector<4x128xf32>
    %18 = math.tanh %17 : vector<4x128xf32>
    %19 = arith.truncf %18 : vector<4x128xf32> to vector<4x128xbf16>
    %c2 = arith.constant 2 : index
    %c0_13 = arith.constant 0 : index
    %c0_14 = arith.constant 0 : index
    %20 = vector.load %arg2[%c2, %c0_13, %c0_14] : memref<4x128x128xbf16, #tpu.memory_space<vmem>>, vector<1x128x128xbf16>
    %21 = vector.shape_cast %20 : vector<1x128x128xbf16> to vector<128x128xbf16>
    %cst_15 = arith.constant dense<0.000000e+00> : vector<4x128xf32>
    %22 = tpu.matmul %19, %21, %cst_15 {dimension_numbers = #tpu.dot_dimension_numbers<[1], [0], [0], [1], [0, 0, 1, 1], [], []>} : vector<4x128xbf16>, vector<128x128xbf16>, vector<4x128xf32> -> vector<4x128xf32>
    %c2_16 = arith.constant 2 : index
    %c0_17 = arith.constant 0 : index
    %c0_18 = arith.constant 0 : index
    %23 = vector.load %arg3[%c2_16, %c0_17, %c0_18] : memref<4x1x128xf32, #tpu.memory_space<vmem>>, vector<1x1x128xf32>
    %24 = vector.shape_cast %23 : vector<1x1x128xf32> to vector<1x128xf32>
    %25 = vector.broadcast %24 : vector<1x128xf32> to vector<4x128xf32>
    %26 = arith.addf %22, %25 : vector<4x128xf32>
    %27 = math.tanh %26 : vector<4x128xf32>
    %28 = arith.truncf %27 : vector<4x128xf32> to vector<4x128xbf16>
    %c3 = arith.constant 3 : index
    %c0_19 = arith.constant 0 : index
    %c0_20 = arith.constant 0 : index
    %29 = vector.load %arg2[%c3, %c0_19, %c0_20] : memref<4x128x128xbf16, #tpu.memory_space<vmem>>, vector<1x128x128xbf16>
    %30 = vector.shape_cast %29 : vector<1x128x128xbf16> to vector<128x128xbf16>
    %cst_21 = arith.constant dense<0.000000e+00> : vector<4x128xf32>
    %31 = tpu.matmul %28, %30, %cst_21 {dimension_numbers = #tpu.dot_dimension_numbers<[1], [0], [0], [1], [0, 0, 1, 1], [], []>} : vector<4x128xbf16>, vector<128x128xbf16>, vector<4x128xf32> -> vector<4x128xf32>
    %c3_22 = arith.constant 3 : index
    %c0_23 = arith.constant 0 : index
    %c0_24 = arith.constant 0 : index
    %32 = vector.load %arg3[%c3_22, %c0_23, %c0_24] : memref<4x1x128xf32, #tpu.memory_space<vmem>>, vector<1x1x128xf32>
    %33 = vector.shape_cast %32 : vector<1x1x128xf32> to vector<1x128xf32>
    %34 = vector.broadcast %33 : vector<1x128xf32> to vector<4x128xf32>
    %35 = arith.addf %31, %34 : vector<4x128xf32>
    %c0_25 = arith.constant 0 : index
    %c0_26 = arith.constant 0 : index
    %36 = vector.load %arg4[%c0_25, %c0_26] : memref<4x128xf32, #tpu.memory_space<vmem>>, vector<4x128xf32>
    tpu.vector_store %arg4[%c0_25, %c0_26], %35 {strides = array<i32>} : memref<4x128xf32, #tpu.memory_space<vmem>>, vector<4x128xf32>,
    return
  }
  func.func @transform_0(%arg0: i32) -> (i32, i32) {
    %c0_i32 = arith.constant 0 : i32
    %c0_i32_0 = arith.constant 0 : i32
    return %arg0, %c0_i32 : i32, i32
  }
  func.func @transform_1(%arg0: i32) -> (i32, i32, i32) {
    %c0_i32 = arith.constant 0 : i32
    %c0_i32_0 = arith.constant 0 : i32
    %c0_i32_1 = arith.constant 0 : i32
    %c0_i32_2 = arith.constant 0 : i32
    return %c0_i32, %c0_i32_0, %c0_i32_1 : i32, i32, i32
  }
  func.func @transform_2(%arg0: i32) -> (i32, i32, i32) {
    %c0_i32 = arith.constant 0 : i32
    %c0_i32_0 = arith.constant 0 : i32
    %c0_i32_1 = arith.constant 0 : i32
    %c0_i32_2 = arith.constant 0 : i32
    return %c0_i32, %c0_i32_0, %c0_i32_1 : i32, i32, i32
  }
  func.func @transform_3(%arg0: i32) -> (i32, i32) {
    %c0_i32 = arith.constant 0 : i32
    %c0_i32_0 = arith.constant 0 : i32
    return %arg0, %c0_i32 : i32, i32
  }
}

</mosaic_0001>

<bundles_post_ra>
// kernel: item_ae_forward.1
= control target key start
LH: loop header
LB: loop body
LE: loop exit
PB: predicated region body
PF: predicated region fallthrough
CT: control target
= control target key end

     0   :  { %8 = vsyncpa [#allocation3], 0  ;;  %s713_s12 = smov [#allocation2]   ;;  %s799_s0 = inlined_call_operand.vmem [shape: f32[4,128], index: 0, kind: input, shape index: {}]   ;;  %s800_s1 = inlined_call_operand.hbm [shape: bf16[4,128,128], index: 1, kind: input, shape index: {}]   ;;  %s801_s2 = inlined_call_operand.vmem [shape: f32[4,1,128], index: 2, kind: input, shape index: {}]   ;;  %s802_s3 = inlined_call_operand.vmem [shape: f32[4,128], index: 3, kind: output, shape index: {}]  }
   0x1   :  { %s16_s13 = sshll.u32 %s713_s12, 4  ;;  %s17_s13 = int_to_ptr.vmem [resolvable:$true] %s16_s13 }
   0x2   :  { %s699_s14 = scalar_lea.vmem %s17_s13, 4096  ;;  %p704_p1 = scmp.lt.s32.totalorder %s17_s13, %s17_s13 }
   0x3   :  { %p700_p0 = scmp.ne.s32.totalorder %s17_s13, %s699_s14  ;;  %p705_p2 = scmp.lt.s32.totalorder %s699_s14, %s699_s14 }
   0x5   :  { %p706_p3 = por %p705_p2, %p704_p1 }
   0x7   :  { %p707_p4 = pnand %p706_p3, %p700_p0 }
   0x9   :  { %710 = shalt.err (!%p707_p4)
}
   0xa   :  { %s714_s15 = smov 64   ;;  %s715_s16 = smov 4  }
   0xb   :  { %22 = dma.hbm_to_vmem [thread:$0]  %s800_s1, 4096, %s17_s13, [#allocation3], %s714_s15, %s714_s15, %s715_s16  }
   0xc   :  { %711 = dma.done.wait [#allocation3], 4096  }
   0xd   :  { %712 = vsyncadd [#allocation3], 4294963200  ;;  %v716_v0 = vmov 0.0   ;;  %vm717_vm0 = vmmov 0   ;;  %v653_v1 = vld [vmem:[#allocation2 + $0x38] sm:$0xff]   ;;  %v654_v2 = vld [vmem:[#allocation2 + $0x30] sm:$0xff]  }
   0xe   :  { %568 = vmatprep.subr.bf16.mxu0 %v716_v0  ;;  %584 = vmatprep.mubr.msk.bf16.mxu0 %vm717_vm0, %v716_v0  ;;  %v655_v3 = vld [vmem:[#allocation2 + $0x28] sm:$0xff]   ;;  %v661_v4 = vld [vmem:[#allocation2 + $0x78] sm:$0xff]   ;;  %v656_v5 = vld [vmem:[#allocation2 + $0x20] sm:$0xff]  }
   0xf   :  { %588 = vmatprep.subr.bf16.mxu1 %v716_v0  ;;  %604 = vmatprep.mubr.msk.bf16.mxu1 %vm717_vm0, %v716_v0  ;;  %v662_v6 = vld [vmem:[#allocation2 + $0x70] sm:$0xff]   ;;  %v657_v7 = vld [vmem:[#allocation2 + $0x18] sm:$0xff]   ;;  %v663_v8 = vld [vmem:[#allocation2 + $0x68] sm:$0xff]  }
  0x10   :  { %569 = vmatpush3.bf16.msra.mxu0 %v653_v1  ;;  %589 = vmatpush3.bf16.msra.mxu1 %v661_v4  ;;  %v658_v9 = vld [vmem:[#allocation2 + $0x10] sm:$0xff]   ;;  %v659_v10 = vld [vmem:[#allocation2 + $0x8] sm:$0xff]   ;;  %v660_v11 = vld [vmem:[#allocation2] sm:$0xff]  }
  0x11   :  { %570 = vmatprep.subr.bf16.mxu0 %v716_v0  ;;  %590 = vmatprep.subr.bf16.mxu1 %v716_v0  ;;  %v29_v12 = vld [vmem:[%s799_s0] sm:$0xf]  ;;  %v665_v15 = vld [vmem:[#allocation2 + $0x58] sm:$0xff]   ;;  %v666_v16 = vld [vmem:[#allocation2 + $0x50] sm:$0xff]  }
  0x12   :  { %v30_v13 = vpack.c.bf16 %v29_v12, %v29_v12  ;;  %v664_v14 = vld [vmem:[#allocation2 + $0x60] sm:$0xff]   ;;  %v667_v17 = vld [vmem:[#allocation2 + $0x48] sm:$0xff]   ;;  %v669_v19 = vld [vmem:[#allocation2 + $0xb8] sm:$0xff]  }
  0x13   :  { %v668_v18 = vld [vmem:[#allocation2 + $0x40] sm:$0xff]   ;;  %v670_v20 = vld [vmem:[#allocation2 + $0xb0] sm:$0xff]   ;;  %v671_v21 = vld [vmem:[#allocation2 + $0xa8] sm:$0xff]  }
  0x14   :  { %571 = vmatpush3.bf16.msra.mxu0 %v654_v2  ;;  %591 = vmatpush3.bf16.msra.mxu1 %v662_v6  ;;  %v493_v22 = vld [vmem:[%s801_s2] ss:$0 sm:$0xff]  ;;  %v673_v31 = vld [vmem:[#allocation2 + $0x98] sm:$0xff]   ;;  %v674_v32 = vld [vmem:[#allocation2 + $0x90] sm:$0xff]  }
  0x15   :  { %572 = vmatprep.subr.bf16.mxu0 %v716_v0  ;;  %592 = vmatprep.subr.bf16.mxu1 %v716_v0  ;;  %v672_v30 = vld [vmem:[#allocation2 + $0xa0] sm:$0xff]   ;;  %v675_v33 = vld [vmem:[#allocation2 + $0x88] sm:$0xff]   ;;  %v677_v35 = vld [vmem:[#allocation2 + $0xf8] sm:$0xff]  }
  0x16   :  { %v676_v34 = vld [vmem:[#allocation2 + $0x80] sm:$0xff]   ;;  %v678_v36 = vld [vmem:[#allocation2 + $0xf0] sm:$0xff]   ;;  %v679_v37 = vld [vmem:[#allocation2 + $0xe8] sm:$0xff]  }
  0x17   :  { %v503_v38 = vld [vmem:[%s801_s2 + $0x1] ss:$0 sm:$0xff]  ;;  %v681_v47 = vld [vmem:[#allocation2 + $0xd8] sm:$0xff]   ;;  %v682_v48 = vld [vmem:[#allocation2 + $0xd0] sm:$0xff]  }
  0x18   :  { %573 = vmatpush3.bf16.msra.mxu0 %v655_v3  ;;  %593 = vmatpush3.bf16.msra.mxu1 %v663_v8  ;;  %v680_v46 = vld [vmem:[#allocation2 + $0xe0] sm:$0xff]   ;;  %v683_v49 = vld [vmem:[#allocation2 + $0xc8] sm:$0xff]  }
  0x19   :  { %574 = vmatprep.subr.bf16.mxu0 %v716_v0  ;;  %594 = vmatprep.subr.bf16.mxu1 %v716_v0  ;;  %v684_v50 = vld [vmem:[#allocation2 + $0xc0] sm:$0xff]  }
  0x1a   :  { %v513_v51 = vld [vmem:[%s801_s2 + $0x2] ss:$0 sm:$0xff]  ;;  %v523_v59 = vld [vmem:[%s801_s2 + $0x3] ss:$0 sm:$0xff] }
  0x1c   :  { %575 = vmatpush3.bf16.msra.mxu0 %v656_v5  ;;  %595 = vmatpush3.bf16.msra.mxu1 %v664_v14 }
  0x1d   :  { %576 = vmatprep.subr.bf16.mxu0 %v716_v0  ;;  %596 = vmatprep.subr.bf16.mxu1 %v716_v0 }
  0x20   :  { %577 = vmatpush3.bf16.msra.mxu0 %v657_v7  ;;  %597 = vmatpush3.bf16.msra.mxu1 %v665_v15 }
  0x21   :  { %578 = vmatprep.subr.bf16.mxu0 %v716_v0  ;;  %598 = vmatprep.subr.bf16.mxu1 %v716_v0 }
  0x24   :  { %579 = vmatpush3.bf16.msra.mxu0 %v658_v9  ;;  %599 = vmatpush3.bf16.msra.mxu1 %v666_v16 }
  0x25   :  { %580 = vmatprep.subr.bf16.mxu0 %v716_v0  ;;  %600 = vmatprep.subr.bf16.mxu1 %v716_v0 }
  0x28   :  { %581 = vmatpush3.bf16.msra.mxu0 %v659_v10  ;;  %601 = vmatpush3.bf16.msra.mxu1 %v667_v17 }
  0x29   :  { %582 = vmatprep.subr.bf16.mxu0 %v716_v0  ;;  %602 = vmatprep.subr.bf16.mxu1 %v716_v0 }
  0x2c   :  { %583 = vmatpush3.bf16.msra.mxu0 %v660_v11  ;;  %603 = vmatpush3.bf16.msra.mxu1 %v668_v18 }
  0x2d   :  { %608 = vmatprep.subr.bf16.mxu0 %v716_v0  ;;  %628 = vmatprep.subr.bf16.mxu1 %v716_v0 }
  0x2f   :  { %585 = vmatmul.mubr.bf16.vlgmr.msra.gmra.mxu0 %v30_v13 }
  0x30   :  { %624 = vmatprep.mubr.msk.bf16.mxu0 %vm717_vm0, %v716_v0  ;;  %609 = vmatpush3.bf16.msra.mxu0 %v669_v19 }
  0x31   :  { %610 = vmatprep.subr.bf16.mxu0 %v716_v0 }
  0x34   :  { %611 = vmatpush3.bf16.msra.mxu0 %v670_v20 }
  0x35   :  { %612 = vmatprep.subr.bf16.mxu0 %v716_v0 }
  0x38   :  { %613 = vmatpush3.bf16.msra.mxu0 %v671_v21 }
  0x39   :  { %614 = vmatprep.subr.bf16.mxu0 %v716_v0 }
  0x3c   :  { %615 = vmatpush3.bf16.msra.mxu0 %v672_v30 }
  0x3d   :  { %616 = vmatprep.subr.bf16.mxu0 %v716_v0 }
  0x40   :  { %617 = vmatpush3.bf16.msra.mxu0 %v673_v31 }
  0x41   :  { %618 = vmatprep.subr.bf16.mxu0 %v716_v0 }
  0x44   :  { %619 = vmatpush3.bf16.msra.mxu0 %v674_v32 }
  0x45   :  { %620 = vmatprep.subr.bf16.mxu0 %v716_v0 }
  0x48   :  { %621 = vmatpush3.bf16.msra.mxu0 %v675_v33 }
  0x49   :  { %622 = vmatprep.subr.bf16.mxu0 %v716_v0 }
  0x4c   :  { %623 = vmatpush3.bf16.msra.mxu0 %v676_v34 }
  0xef   :  { %v136_v23 = vpop.f32.mrf.mxu0 }
  0xf0   :  { %v137_v24 = vadd.f32 %v493_v22, %v136_v23 }
  0xf1   :  { %v586_v25 = vpop.f32.mrf.mxu0 }
  0xf2   :  { %685 = vtanh.f32 %v137_v24 }
  0xf3   :  { %v139_v26 = vpop.f32.mrf.mxu0 }
  0xf5   :  { %v587_v27 = vpop.f32.mrf.mxu0 }
  0xff   :  { %v686_v28 = vpop.eup %685 }
 0x100   :  { %v143_v29 = vpack.c.bf16 %v686_v28, %v686_v28 }
 0x102   :  { %605 = vmatmul.mubr.bf16.vlgmr.msra.gmra.mxu1 %v143_v29 }
 0x103   :  { %644 = vmatprep.mubr.msk.bf16.mxu1 %vm717_vm0, %v716_v0  ;;  %629 = vmatpush3.bf16.msra.mxu1 %v677_v35 }
 0x104   :  { %630 = vmatprep.subr.bf16.mxu1 %v716_v0 }
 0x107   :  { %631 = vmatpush3.bf16.msra.mxu1 %v678_v36 }
 0x108   :  { %632 = vmatprep.subr.bf16.mxu1 %v716_v0 }
 0x10b   :  { %633 = vmatpush3.bf16.msra.mxu1 %v679_v37 }
 0x10c   :  { %634 = vmatprep.subr.bf16.mxu1 %v716_v0 }
 0x10f   :  { %635 = vmatpush3.bf16.msra.mxu1 %v680_v46 }
 0x110   :  { %636 = vmatprep.subr.bf16.mxu1 %v716_v0 }
 0x113   :  { %637 = vmatpush3.bf16.msra.mxu1 %v681_v47 }
 0x114   :  { %638 = vmatprep.subr.bf16.mxu1 %v716_v0 }
 0x117   :  { %639 = vmatpush3.bf16.msra.mxu1 %v682_v48 }
 0x118   :  { %640 = vmatprep.subr.bf16.mxu1 %v716_v0 }
 0x11b   :  { %641 = vmatpush3.bf16.msra.mxu1 %v683_v49 }
 0x11c   :  { %642 = vmatprep.subr.bf16.mxu1 %v716_v0 }
 0x11f   :  { %643 = vmatpush3.bf16.msra.mxu1 %v684_v50 }
 0x1c2   :  { %v251_v39 = vpop.f32.mrf.mxu1 }
 0x1c3   :  { %v252_v40 = vadd.f32 %v503_v38, %v251_v39 }
 0x1c4   :  { %v606_v41 = vpop.f32.mrf.mxu1 }
 0x1c5   :  { %687 = vtanh.f32 %v252_v40 }
 0x1c6   :  { %v254_v42 = vpop.f32.mrf.mxu1 }
 0x1c8   :  { %v607_v43 = vpop.f32.mrf.mxu1 }
 0x1d2   :  { %v688_v44 = vpop.eup %687 }
 0x1d3   :  { %v258_v45 = vpack.c.bf16 %v688_v44, %v688_v44 }
 0x1d5   :  { %625 = vmatmul.mubr.bf16.vlgmr.msra.gmra.mxu0 %v258_v45 }
 0x295   :  { %v366_v52 = vpop.f32.mrf.mxu0 }
 0x296   :  { %v367_v53 = vadd.f32 %v513_v51, %v366_v52 }
 0x297   :  { %v626_v54 = vpop.f32.mrf.mxu0 }
 0x298   :  { %689 = vtanh.f32 %v367_v53 }
 0x299   :  { %v369_v55 = vpop.f32.mrf.mxu0 }
 0x29b   :  { %v627_v56 = vpop.f32.mrf.mxu0 }
 0x2a5   :  { %v690_v57 = vpop.eup %689 }
 0x2a6   :  { %v373_v58 = vpack.c.bf16 %v690_v57, %v690_v57 }
 0x2a8   :  { %645 = vmatmul.mubr.bf16.vlgmr.msra.gmra.mxu1 %v373_v58 }
 0x368   :  { %v481_v60 = vpop.f32.mrf.mxu1 }
 0x369   :  { %v482_v61 = vadd.f32 %v523_v59, %v481_v60 }
 0x36a   :  { %v646_v62 = vpop.f32.mrf.mxu1 }
 0x36b   :  { %487 = vst [vmem:[%s802_s3] sm:$0xf] %v482_v61 }
 0x36c   :  { %v484_v63 = vpop.f32.mrf.mxu1 }
 0x36e   :  { %v647_v0 = vpop.f32.mrf.mxu1 }
 0x36f   :  { %492 = vsyncpa [#allocation3], 1 }

</bundles_post_ra>
